<compile_context>
chip_gen: v6e
topology: v6e:2x2x1
jax: 0.10.0
libtpu: 0.0.40
codegen_flags: <defaults>
</compile_context>

<pallas_src>
import functools

import jax
import jax.numpy as jnp
from jax.experimental import pallas as pl
from jax.experimental.pallas import tpu as pltpu

_LANES = 128     # output last dim padded to a multiple of this (lane-dense stores)
_SUBLANES = 8    # batch-tile granularity


def _round_up(x, m):
    return ((x + m - 1) // m) * m


def _mlp_kernel(x_ref, w1_ref, b1_ref, w2_ref, b2_ref, w3_ref, b3_ref,
                w4_ref, b4_ref, o_ref):
    """Fused 4-layer MLP: bf16 matmuls on the MXU, f32 accumulation / bias / ReLU."""
    # layer 1 + ReLU
    h = jnp.dot(x_ref[...], w1_ref[...], preferred_element_type=jnp.float32)
    h = jnp.maximum(h + b1_ref[...], 0.0)
    # dropout (p=0.0) is the identity -> no-op
    # layer 2 + ReLU
    h = jnp.dot(h.astype(jnp.bfloat16), w2_ref[...], preferred_element_type=jnp.float32)
    h = jnp.maximum(h + b2_ref[...], 0.0)
    # layer 3 + ReLU
    h = jnp.dot(h.astype(jnp.bfloat16), w3_ref[...], preferred_element_type=jnp.float32)
    h = jnp.maximum(h + b3_ref[...], 0.0)
    # layer 4 (no activation); lane-dense padded output
    out = jnp.dot(h.astype(jnp.bfloat16), w4_ref[...], preferred_element_type=jnp.float32)
    o_ref[...] = (out + b4_ref[...]).astype(o_ref.dtype)


@functools.partial(jax.jit, static_argnames=("tile_b",))
def net_ann_4_no_bn_forward(x, params, *, tile_b=512):
    """Fused forward pass.

    x:       (B, n_in) float32
    params:  dict w1..w4 (in, out) float32, b1..b4 (1, out) float32
    returns: (B, n_out) float32
    """
    B, n_in = x.shape
    neurons = params["w1"].shape[1]
    n_out = params["w4"].shape[1]
    n_out_p = _round_up(n_out, _LANES)          # lane-dense output width

    # ---- batch tiling: clamp tile to (padded) batch, keep sublane-aligned -------------
    b_min = _round_up(B, _SUBLANES)
    tile_b = max(_SUBLANES, min(int(tile_b), b_min))
    tile_b = (tile_b // _SUBLANES) * _SUBLANES

    # ---- VMEM budget guard (conservative for v7x's 64 MiB/TC); shrink tile if needed ---
    def vmem_est(tb):
        w_bytes = 2 * 2 * (n_in * neurons + 2 * neurons * neurons + neurons * n_out_p)  # bf16, dbl-buf
        b_bytes = 2 * 4 * (3 * neurons + n_out_p)                                       # f32, dbl-buf
        x_bytes = 2 * 2 * tb * n_in                                                     # bf16 tile
        o_bytes = 2 * 4 * tb * n_out_p                                                  # f32 tile
        act_bytes = 4 * 4 * tb * neurons                                                # f32 intermediates
        return w_bytes + b_bytes + x_bytes + o_bytes + act_bytes

    vmem_budget = 40 * 1024 * 1024
    while tile_b > _SUBLANES and vmem_est(tile_b) > vmem_budget:
        tile_b = max(_SUBLANES, ((tile_b // 2) // _SUBLANES) * _SUBLANES)

    b_pad = _round_up(B, tile_b)
    grid = (b_pad // tile_b,)
    # NOTE(v7x): for large B, prefer tile_b such that grid length is even (>=2) so both
    # TensorCores get work; for the tiny demo a single grid step is fine.

    # ---- prepare operands: pad batch, pad n_out to 128 lanes, cast to bf16 -------------
    x_p = x if b_pad == B else jnp.pad(x, ((0, b_pad - B), (0, 0)))
    x_p = x_p.astype(jnp.bfloat16)

    w1 = params["w1"].astype(jnp.bfloat16)
    w2 = params["w2"].astype(jnp.bfloat16)
    w3 = params["w3"].astype(jnp.bfloat16)
    w4 = jnp.pad(params["w4"], ((0, 0), (0, n_out_p - n_out))).astype(jnp.bfloat16)
    b1 = params["b1"].astype(jnp.float32)
    b2 = params["b2"].astype(jnp.float32)
    b3 = params["b3"].astype(jnp.float32)
    b4 = jnp.pad(params["b4"], ((0, 0), (0, n_out_p - n_out))).astype(jnp.float32)

    # ---- cost hint for the XLA scheduler ----------------------------------------------
    flops = 2 * b_pad * (n_in * neurons + 2 * neurons * neurons + neurons * n_out_p)
    bytes_accessed = (x_p.size * 2
                      + (w1.size + w2.size + w3.size + w4.size) * 2
                      + (b1.size + b2.size + b3.size + b4.size) * 4
                      + b_pad * n_out_p * 4)
    cost = pl.CostEstimate(flops=flops, transcendentals=0, bytes_accessed=bytes_accessed)

    def full(shape):
        # weight / bias blocks: whole array at every grid step
        return pl.BlockSpec(shape, lambda i: (0, 0))

    out_p = pl.pallas_call(
        _mlp_kernel,
        out_shape=jax.ShapeDtypeStruct((b_pad, n_out_p), jnp.float32),
        grid_spec=pltpu.PrefetchScalarGridSpec(
            num_scalar_prefetch=0,
            grid=grid,
            in_specs=[
                pl.BlockSpec((tile_b, n_in), lambda i: (i, 0)),       # x tile (bf16)
                full((n_in, neurons)),    full((1, neurons)),         # w1, b1
                full((neurons, neurons)), full((1, neurons)),         # w2, b2
                full((neurons, neurons)), full((1, neurons)),         # w3, b3
                full((neurons, n_out_p)), full((1, n_out_p)),         # w4, b4 (lane-padded)
            ],
            out_specs=pl.BlockSpec((tile_b, n_out_p), lambda i: (i, 0)),
        ),
        compiler_params=pltpu.CompilerParams(
            dimension_semantics=("parallel",),
            vmem_limit_bytes=vmem_budget + (8 << 20),
        ),
        cost_estimate=cost,
    )(x_p, w1, b1, w2, b2, w3, b3, w4, b4)

    return out_p[:B, :n_out]


def init_params(key, n_in, n_out, neurons=128):
    """Deterministic init mimicking torch.nn.Linear default U(-1/sqrt(fan_in), 1/sqrt(fan_in))."""
    dims = [(n_in, neurons), (neurons, neurons), (neurons, neurons), (neurons, n_out)]
    params = {}
    for idx, (fan_in, fan_out) in enumerate(dims, start=1):
        key, kw, kb = jax.random.split(key, 3)
        bound = 1.0 / jnp.sqrt(jnp.float32(fan_in))
        params[f"w{idx}"] = jax.random.uniform(
            kw, (fan_in, fan_out), jnp.float32, -bound, bound)
        params[f"b{idx}"] = jax.random.uniform(
            kb, (1, fan_out), jnp.float32, -bound, bound)
    return params


def _reference_forward_f32(x, params):
    """Original (full f32) module semantics."""
    h = jax.nn.relu(x @ params["w1"] + params["b1"])
    h = jax.nn.relu(h @ params["w2"] + params["b2"])
    h = jax.nn.relu(h @ params["w3"] + params["b3"])
    return h @ params["w4"] + params["b4"]


def _reference_forward_matched(x, params):
    """Pure-JAX reference with the same bf16-input / f32-accumulation math as the kernel."""
    w = {k: params[k].astype(jnp.bfloat16) for k in ("w1", "w2", "w3", "w4")}
    h = jnp.dot(x.astype(jnp.bfloat16), w["w1"], preferred_element_type=jnp.float32)
    h = jnp.maximum(h + params["b1"], 0.0)
    h = jnp.dot(h.astype(jnp.bfloat16), w["w2"], preferred_element_type=jnp.float32)
    h = jnp.maximum(h + params["b2"], 0.0)
    h = jnp.dot(h.astype(jnp.bfloat16), w["w3"], preferred_element_type=jnp.float32)
    h = jnp.maximum(h + params["b3"], 0.0)
    return jnp.dot(h.astype(jnp.bfloat16), w["w4"],
                   preferred_element_type=jnp.float32) + params["b4"]


if __name__ == "__main__":
    n_in, n_out, neurons = 64, 32, 128
    batch = 16

    key = jax.random.PRNGKey(0)
    key, kx = jax.random.split(key)
    x = jax.random.normal(kx, (batch, n_in), jnp.float32)
    params = init_params(key, n_in, n_out, neurons)

    out = net_ann_4_no_bn_forward(x, params)
    out = jax.block_until_ready(out)
    assert out.shape == (batch, n_out)

    # Tight check vs a matched-precision (bf16 in, f32 acc) pure-JAX reference.
    ref_m = _reference_forward_matched(x, params)
    assert jnp.allclose(out, ref_m, atol=2e-3, rtol=2e-3), "mismatch vs matched-precision reference"

    # Looser sanity check vs the original full-f32 semantics (bf16 rounding only).
    ref_f32 = _reference_forward_f32(x, params)
    assert jnp.allclose(out, ref_f32, atol=5e-2, rtol=5e-2), "drift vs f32 reference too large"

    print("KERNEL_OK")
</pallas_src>

<mosaic_0001>
module attributes {stable_mosaic.version = 11 : i64} {
  func.func @_mlp_kernel(%arg0: i32, %arg1: memref<16x64xbf16, #tpu.memory_space<vmem>>, %arg2: memref<64x128xbf16, #tpu.memory_space<vmem>>, %arg3: memref<1x128xf32, #tpu.memory_space<vmem>>, %arg4: memref<128x128xbf16, #tpu.memory_space<vmem>>, %arg5: memref<1x128xf32, #tpu.memory_space<vmem>>, %arg6: memref<128x128xbf16, #tpu.memory_space<vmem>>, %arg7: memref<1x128xf32, #tpu.memory_space<vmem>>, %arg8: memref<128x128xbf16, #tpu.memory_space<vmem>>, %arg9: memref<1x128xf32, #tpu.memory_space<vmem>>, %arg10: memref<16x128xf32, #tpu.memory_space<vmem>>) attributes {dimension_semantics = [#tpu.dimension_semantics<parallel>], iteration_bounds = array<i64: 1>, scalar_prefetch = 0 : i64, scratch_operands = 0 : i64, tpu.core_type = #tpu.core_type<tc>, window_params = [{transform_indices = @transform_0, window_bounds = array<i64: 16, 64>}, {pipeline_mode = #tpu.pipeline_mode<synchronous>, transform_indices = @transform_1, window_bounds = array<i64: 64, 128>}, {pipeline_mode = #tpu.pipeline_mode<synchronous>, transform_indices = @transform_2, window_bounds = array<i64: 1, 128>}, {pipeline_mode = #tpu.pipeline_mode<synchronous>, transform_indices = @transform_3, window_bounds = array<i64: 128, 128>}, {pipeline_mode = #tpu.pipeline_mode<synchronous>, transform_indices = @transform_4, window_bounds = array<i64: 1, 128>}, {pipeline_mode = #tpu.pipeline_mode<synchronous>, transform_indices = @transform_5, window_bounds = array<i64: 128, 128>}, {pipeline_mode = #tpu.pipeline_mode<synchronous>, transform_indices = @transform_6, window_bounds = array<i64: 1, 128>}, {pipeline_mode = #tpu.pipeline_mode<synchronous>, transform_indices = @transform_7, window_bounds = array<i64: 128, 128>}, {pipeline_mode = #tpu.pipeline_mode<synchronous>, transform_indices = @transform_8, window_bounds = array<i64: 1, 128>}, {transform_indices = @transform_9, window_bounds = array<i64: 16, 128>}]} {
    %c0 = arith.constant 0 : index
    %c0_0 = arith.constant 0 : index
    %0 = vector.load %arg1[%c0, %c0_0] : memref<16x64xbf16, #tpu.memory_space<vmem>>, vector<16x64xbf16>
    %c0_1 = arith.constant 0 : index
    %c0_2 = arith.constant 0 : index
    %1 = vector.load %arg2[%c0_1, %c0_2] : memref<64x128xbf16, #tpu.memory_space<vmem>>, vector<64x128xbf16>
    %cst = arith.constant dense<0.000000e+00> : vector<16x128xf32>
    %2 = tpu.matmul %0, %1, %cst {dimension_numbers = #tpu.dot_dimension_numbers<[1], [0], [0], [1], [0, 0, 1, 1], [], []>} : vector<16x64xbf16>, vector<64x128xbf16>, vector<16x128xf32> -> vector<16x128xf32>
    %c0_3 = arith.constant 0 : index
    %c0_4 = arith.constant 0 : index
    %3 = vector.load %arg3[%c0_3, %c0_4] : memref<1x128xf32, #tpu.memory_space<vmem>>, vector<1x128xf32>
    %4 = vector.broadcast %3 : vector<1x128xf32> to vector<16x128xf32>
    %5 = arith.addf %2, %4 : vector<16x128xf32>
    %cst_5 = arith.constant 0.000000e+00 : f32
    %6 = vector.broadcast %cst_5 : f32 to vector<16x128xf32>
    %7 = arith.maximumf %5, %6 : vector<16x128xf32>
    %8 = arith.truncf %7 : vector<16x128xf32> to vector<16x128xbf16>
    %c0_6 = arith.constant 0 : index
    %c0_7 = arith.constant 0 : index
    %9 = vector.load %arg4[%c0_6, %c0_7] : memref<128x128xbf16, #tpu.memory_space<vmem>>, vector<128x128xbf16>
    %cst_8 = arith.constant dense<0.000000e+00> : vector<16x128xf32>
    %10 = tpu.matmul %8, %9, %cst_8 {dimension_numbers = #tpu.dot_dimension_numbers<[1], [0], [0], [1], [0, 0, 1, 1], [], []>} : vector<16x128xbf16>, vector<128x128xbf16>, vector<16x128xf32> -> vector<16x128xf32>
    %c0_9 = arith.constant 0 : index
    %c0_10 = arith.constant 0 : index
    %11 = vector.load %arg5[%c0_9, %c0_10] : memref<1x128xf32, #tpu.memory_space<vmem>>, vector<1x128xf32>
    %12 = vector.broadcast %11 : vector<1x128xf32> to vector<16x128xf32>
    %13 = arith.addf %10, %12 : vector<16x128xf32>
    %cst_11 = arith.constant 0.000000e+00 : f32
    %14 = vector.broadcast %cst_11 : f32 to vector<16x128xf32>
    %15 = arith.maximumf %13, %14 : vector<16x128xf32>
    %16 = arith.truncf %15 : vector<16x128xf32> to vector<16x128xbf16>
    %c0_12 = arith.constant 0 : index
    %c0_13 = arith.constant 0 : index
    %17 = vector.load %arg6[%c0_12, %c0_13] : memref<128x128xbf16, #tpu.memory_space<vmem>>, vector<128x128xbf16>
    %cst_14 = arith.constant dense<0.000000e+00> : vector<16x128xf32>
    %18 = tpu.matmul %16, %17, %cst_14 {dimension_numbers = #tpu.dot_dimension_numbers<[1], [0], [0], [1], [0, 0, 1, 1], [], []>} : vector<16x128xbf16>, vector<128x128xbf16>, vector<16x128xf32> -> vector<16x128xf32>
    %c0_15 = arith.constant 0 : index
    %c0_16 = arith.constant 0 : index
    %19 = vector.load %arg7[%c0_15, %c0_16] : memref<1x128xf32, #tpu.memory_space<vmem>>, vector<1x128xf32>
    %20 = vector.broadcast %19 : vector<1x128xf32> to vector<16x128xf32>
    %21 = arith.addf %18, %20 : vector<16x128xf32>
    %cst_17 = arith.constant 0.000000e+00 : f32
    %22 = vector.broadcast %cst_17 : f32 to vector<16x128xf32>
    %23 = arith.maximumf %21, %22 : vector<16x128xf32>
    %24 = arith.truncf %23 : vector<16x128xf32> to vector<16x128xbf16>
    %c0_18 = arith.constant 0 : index
    %c0_19 = arith.constant 0 : index
    %25 = vector.load %arg8[%c0_18, %c0_19] : memref<128x128xbf16, #tpu.memory_space<vmem>>, vector<128x128xbf16>
    %cst_20 = arith.constant dense<0.000000e+00> : vector<16x128xf32>
    %26 = tpu.matmul %24, %25, %cst_20 {dimension_numbers = #tpu.dot_dimension_numbers<[1], [0], [0], [1], [0, 0, 1, 1], [], []>} : vector<16x128xbf16>, vector<128x128xbf16>, vector<16x128xf32> -> vector<16x128xf32>
    %c0_21 = arith.constant 0 : index
    %c0_22 = arith.constant 0 : index
    %27 = vector.load %arg9[%c0_21, %c0_22] : memref<1x128xf32, #tpu.memory_space<vmem>>, vector<1x128xf32>
    %28 = vector.broadcast %27 : vector<1x128xf32> to vector<16x128xf32>
    %29 = arith.addf %26, %28 : vector<16x128xf32>
    %c0_23 = arith.constant 0 : index
    %c0_24 = arith.constant 0 : index
    %30 = vector.load %arg10[%c0_23, %c0_24] : memref<16x128xf32, #tpu.memory_space<vmem>>, vector<16x128xf32>
    tpu.vector_store %arg10[%c0_23, %c0_24], %29 {strides = array<i32>} : memref<16x128xf32, #tpu.memory_space<vmem>>, vector<16x128xf32>,
    return
  }
  func.func @transform_0(%arg0: i32) -> (i32, i32) {
    %c0_i32 = arith.constant 0 : i32
    %c0_i32_0 = arith.constant 0 : i32
    return %arg0, %c0_i32 : i32, i32
  }
  func.func @transform_1(%arg0: i32) -> (i32, i32) {
    %c0_i32 = arith.constant 0 : i32
    %c0_i32_0 = arith.constant 0 : i32
    %c0_i32_1 = arith.constant 0 : i32
    return %c0_i32, %c0_i32_0 : i32, i32
  }
  func.func @transform_2(%arg0: i32) -> (i32, i32) {
    %c0_i32 = arith.constant 0 : i32
    %c0_i32_0 = arith.constant 0 : i32
    %c0_i32_1 = arith.constant 0 : i32
    return %c0_i32, %c0_i32_0 : i32, i32
  }
  func.func @transform_3(%arg0: i32) -> (i32, i32) {
    %c0_i32 = arith.constant 0 : i32
    %c0_i32_0 = arith.constant 0 : i32
    %c0_i32_1 = arith.constant 0 : i32
    return %c0_i32, %c0_i32_0 : i32, i32
  }
  func.func @transform_4(%arg0: i32) -> (i32, i32) {
    %c0_i32 = arith.constant 0 : i32
    %c0_i32_0 = arith.constant 0 : i32
    %c0_i32_1 = arith.constant 0 : i32
    return %c0_i32, %c0_i32_0 : i32, i32
  }
  func.func @transform_5(%arg0: i32) -> (i32, i32) {
    %c0_i32 = arith.constant 0 : i32
    %c0_i32_0 = arith.constant 0 : i32
    %c0_i32_1 = arith.constant 0 : i32
    return %c0_i32, %c0_i32_0 : i32, i32
  }
  func.func @transform_6(%arg0: i32) -> (i32, i32) {
    %c0_i32 = arith.constant 0 : i32
    %c0_i32_0 = arith.constant 0 : i32
    %c0_i32_1 = arith.constant 0 : i32
    return %c0_i32, %c0_i32_0 : i32, i32
  }
  func.func @transform_7(%arg0: i32) -> (i32, i32) {
    %c0_i32 = arith.constant 0 : i32
    %c0_i32_0 = arith.constant 0 : i32
    %c0_i32_1 = arith.constant 0 : i32
    return %c0_i32, %c0_i32_0 : i32, i32
  }
  func.func @transform_8(%arg0: i32) -> (i32, i32) {
    %c0_i32 = arith.constant 0 : i32
    %c0_i32_0 = arith.constant 0 : i32
    %c0_i32_1 = arith.constant 0 : i32
    return %c0_i32, %c0_i32_0 : i32, i32
  }
  func.func @transform_9(%arg0: i32) -> (i32, i32) {
    %c0_i32 = arith.constant 0 : i32
    %c0_i32_0 = arith.constant 0 : i32
    return %arg0, %c0_i32 : i32, i32
  }
}

</mosaic_0001>

<bundles_post_ra>
// kernel: net_ann_4_no_bn_forward.1
= control target key start
LH: loop header
LB: loop body
LE: loop exit
PB: predicated region body
PF: predicated region fallthrough
CT: control target
= control target key end

     0   :  { %v682_v1 = vmov 0.0   ;;  %vm683_vm0 = vmmov 0   ;;  %vm80_vm1 = vcmask 523264   ;;  %s875_s0 = inlined_call_operand.vmem [shape: bf16[16,64], index: 0, kind: input, shape index: {}]   ;;  %s876_s1 = inlined_call_operand.vmem [shape: bf16[64,128], index: 1, kind: input, shape index: {}]   ;;  %s877_s2 = inlined_call_operand.vmem [shape: f32[1,128], index: 2, kind: input, shape index: {}]   ;;  %s878_s3 = inlined_call_operand.vmem [shape: bf16[128,128], index: 3, kind: input, shape index: {}]   ;;  %s879_s4 = inlined_call_operand.vmem [shape: f32[1,128], index: 4, kind: input, shape index: {}]   ;;  %s880_s5 = inlined_call_operand.vmem [shape: bf16[128,128], index: 5, kind: input, shape index: {}]   ;;  %s881_s6 = inlined_call_operand.vmem [shape: f32[1,128], index: 6, kind: input, shape index: {}]   ;;  %s882_s7 = inlined_call_operand.vmem [shape: bf16[128,128], index: 7, kind: input, shape index: {}]   ;;  %s883_s8 = inlined_call_operand.vmem [shape: f32[1,128], index: 8, kind: input, shape index: {}]   ;;  %s884_s9 = inlined_call_operand.hbm [shape: f32[16,128], index: 9, kind: output, shape index: {}]  }
   0x1   :  { %v631_v0 = vld [vmem:[%s876_s1 + $0x18] sm:$0xff]   ;;  %554 = vmatprep.subr.bf16.mxu0 %v682_v1  ;;  %566 = vmatprep.subr.bf16.mxu1 %v682_v1  ;;  %v632_v2 = vld [vmem:[%s876_s1 + $0x10] sm:$0xff]   ;;  %v633_v4 = vld [vmem:[%s876_s1 + $0x8] sm:$0xff]  }
   0x2   :  { %555 = vmatpush3.bf16.msra.mxu0 %v631_v0  ;;  %562 = vmatprep.mubr.msk.bf16.mxu0 %vm683_vm0, %v682_v1  ;;  %v636_v3 = vld [vmem:[%s878_s3 + $0x38] sm:$0xff]   ;;  %v637_v5 = vld [vmem:[%s878_s3 + $0x30] sm:$0xff]   ;;  %v634_v6 = vld [vmem:[%s876_s1] sm:$0xff]  }
   0x3   :  { %556 = vmatprep.subr.bf16.mxu0 %v682_v1  ;;  %582 = vmatprep.mubr.msk.bf16.mxu1 %vm683_vm0, %v682_v1  ;;  %v638_v7 = vld [vmem:[%s878_s3 + $0x28] sm:$0xff]   ;;  %v635_v8 = vld [vmem:[%s875_s0] sm:$0xff]   ;;  %v640_v10 = vld [vmem:[%s878_s3 + $0x18] sm:$0xff]  }
   0x4   :  { %567 = vmatpush3.bf16.msra.mxu1 %v636_v3  ;;  %v639_v9 = vld [vmem:[%s878_s3 + $0x20] sm:$0xff]  }
   0x5   :  { %568 = vmatprep.subr.bf16.mxu1 %v682_v1 }
   0x6   :  { %557 = vmatpush3.bf16.msra.mxu0 %v632_v2 }
   0x7   :  { %558 = vmatprep.subr.bf16.mxu0 %v682_v1 }
   0x8   :  { %569 = vmatpush3.bf16.msra.mxu1 %v637_v5 }
   0x9   :  { %570 = vmatprep.subr.bf16.mxu1 %v682_v1 }
   0xa   :  { %559 = vmatpush3.bf16.msra.mxu0 %v633_v4 }
   0xb   :  { %560 = vmatprep.subr.bf16.mxu0 %v682_v1 }
   0xc   :  { %571 = vmatpush3.bf16.msra.mxu1 %v638_v7 }
   0xd   :  { %572 = vmatprep.subr.bf16.mxu1 %v682_v1 }
   0xe   :  { %561 = vmatpush3.bf16.msra.mxu0 %v634_v6 }
   0xf   :  { %586 = vmatprep.subr.bf16.mxu0 %v682_v1 }
  0x10   :  { %573 = vmatpush3.bf16.msra.mxu1 %v639_v9 }
  0x11   :  { %563 = vmatmul.mubr.msk.bf16.vlgmr.msra.gmra.mxu0 %vm80_vm1, %v635_v8  ;;  %574 = vmatprep.subr.bf16.mxu1 %v682_v1 }
  0x12   :  { %602 = vmatprep.mubr.msk.bf16.mxu0 %vm683_vm0, %v682_v1 }
  0x14   :  { %575 = vmatpush3.bf16.msra.mxu1 %v640_v10 }
  0x15   :  { %14 = vsyncpa [#allocation3], 0  ;;  %576 = vmatprep.subr.bf16.mxu1 %v682_v1  ;;  %v641_v11 = vld [vmem:[%s878_s3 + $0x10] sm:$0xff]   ;;  %v642_v12 = vld [vmem:[%s878_s3 + $0x8] sm:$0xff]  }
  0x16   :  { %v643_v13 = vld [vmem:[%s878_s3] sm:$0xff]   ;;  %v644_v14 = vld [vmem:[%s880_s5 + $0x38] sm:$0xff]   ;;  %v645_v15 = vld [vmem:[%s880_s5 + $0x30] sm:$0xff]  }
  0x17   :  { %587 = vmatpush3.bf16.msra.mxu0 %v644_v14  ;;  %v646_v16 = vld [vmem:[%s880_s5 + $0x28] sm:$0xff]   ;;  %v647_v17 = vld [vmem:[%s880_s5 + $0x20] sm:$0xff]   ;;  %v648_v18 = vld [vmem:[%s880_s5 + $0x18] sm:$0xff]  }
  0x18   :  { %577 = vmatpush3.bf16.msra.mxu1 %v641_v11  ;;  %588 = vmatprep.subr.bf16.mxu0 %v682_v1  ;;  %v488_v19 = vld [vmem:[%s877_s2] ss:$0 sm:$0xff]  ;;  %v649_v29 = vld [vmem:[%s880_s5 + $0x10] sm:$0xff]   ;;  %v650_v30 = vld [vmem:[%s880_s5 + $0x8] sm:$0xff]  }
  0x19   :  { %578 = vmatprep.subr.bf16.mxu1 %v682_v1  ;;  %v651_v31 = vld [vmem:[%s880_s5] sm:$0xff]   ;;  %v652_v32 = vld [vmem:[%s882_s7 + $0x38] sm:$0xff]   ;;  %v653_v33 = vld [vmem:[%s882_s7 + $0x30] sm:$0xff]  }
  0x1a   :  { %v654_v34 = vld [vmem:[%s882_s7 + $0x28] sm:$0xff]   ;;  %v655_v35 = vld [vmem:[%s882_s7 + $0x20] sm:$0xff]   ;;  %v656_v36 = vld [vmem:[%s882_s7 + $0x18] sm:$0xff]  }
  0x1b   :  { %589 = vmatpush3.bf16.msra.mxu0 %v645_v15  ;;  %v495_v37 = vld [vmem:[%s879_s4] ss:$0 sm:$0xff]  ;;  %v657_v47 = vld [vmem:[%s882_s7 + $0x10] sm:$0xff]   ;;  %v658_v48 = vld [vmem:[%s882_s7 + $0x8] sm:$0xff]  }
  0x1c   :  { %579 = vmatpush3.bf16.msra.mxu1 %v642_v12  ;;  %590 = vmatprep.subr.bf16.mxu0 %v682_v1  ;;  %v659_v49 = vld [vmem:[%s882_s7] sm:$0xff]   ;;  %s684_s7 = smov [#allocation2]  }
  0x1d   :  { %580 = vmatprep.subr.bf16.mxu1 %v682_v1  ;;  %v504_v50 = vld [vmem:[%s881_s6] ss:$0 sm:$0xff]  ;;  %s477_s24 = sshll.u32 %s684_s7, 4  ;;  %s478_s24 = int_to_ptr.vmem [resolvable:$true] %s477_s24 }
  0x1e   :  { %v513_v60 = vld [vmem:[%s883_s8] ss:$0 sm:$0xff]  ;;  %s660_s6 = scalar_lea.vmem %s478_s24, 256  ;;  %p665_p1 = scmp.lt.s32.totalorder %s478_s24, %s478_s24 }
  0x1f   :  { %591 = vmatpush3.bf16.msra.mxu0 %v646_v16  ;;  %p661_p0 = scmp.ne.s32.totalorder %s478_s24, %s660_s6  ;;  %p666_p2 = scmp.lt.s32.totalorder %s660_s6, %s660_s6 }
  0x20   :  { %581 = vmatpush3.bf16.msra.mxu1 %v643_v13  ;;  %592 = vmatprep.subr.bf16.mxu0 %v682_v1 }
  0x21   :  { %606 = vmatprep.subr.bf16.mxu1 %v682_v1  ;;  %p667_p3 = por %p666_p2, %p665_p1 }
  0x23   :  { %593 = vmatpush3.bf16.msra.mxu0 %v647_v17  ;;  %p668_p4 = pnand %p667_p3, %p661_p0 }
  0x24   :  { %594 = vmatprep.subr.bf16.mxu0 %v682_v1 }
  0x27   :  { %595 = vmatpush3.bf16.msra.mxu0 %v648_v18 }
  0x28   :  { %596 = vmatprep.subr.bf16.mxu0 %v682_v1 }
  0x2b   :  { %597 = vmatpush3.bf16.msra.mxu0 %v649_v29 }
  0x2c   :  { %598 = vmatprep.subr.bf16.mxu0 %v682_v1 }
  0x2f   :  { %599 = vmatpush3.bf16.msra.mxu0 %v650_v30 }
  0x30   :  { %600 = vmatprep.subr.bf16.mxu0 %v682_v1 }
  0x33   :  { %601 = vmatpush3.bf16.msra.mxu0 %v651_v31 }
  0xd1   :  { %v118_v20 = vpop.f32.mrf.mxu0 }
  0xd2   :  { %v119_v22 = vadd.f32 %v488_v19, %v118_v20 }
  0xd3   :  { %v564_v21 = vpop.f32.mrf.mxu0 }
  0xd4   :  { %v125_v26 = vmax.f32 %v119_v22, 0.0 }
  0xd5   :  { %v121_v23 = vpop.f32.mrf.mxu0 }
  0xd6   :  { %v122_v24 = vadd.f32 %v488_v19, %v121_v23 }
  0xd7   :  { %v565_v25 = vpop.f32.mrf.mxu0 }
  0xd8   :  { %v126_v27 = vmax.f32 %v122_v24, 0.0 }
  0xda   :  { %v127_v28 = vpack.c.bf16 %v126_v27, %v125_v26 }
  0xdc   :  { %583 = vmatmul.mubr.bf16.vlgmr.msra.gmra.mxu1 %v127_v28 }
  0xdd   :  { %622 = vmatprep.mubr.msk.bf16.mxu1 %vm683_vm0, %v682_v1  ;;  %607 = vmatpush3.bf16.msra.mxu1 %v652_v32 }
  0xde   :  { %608 = vmatprep.subr.bf16.mxu1 %v682_v1 }
  0xe1   :  { %609 = vmatpush3.bf16.msra.mxu1 %v653_v33 }
  0xe2   :  { %610 = vmatprep.subr.bf16.mxu1 %v682_v1 }
  0xe5   :  { %611 = vmatpush3.bf16.msra.mxu1 %v654_v34 }
  0xe6   :  { %612 = vmatprep.subr.bf16.mxu1 %v682_v1 }
  0xe9   :  { %613 = vmatpush3.bf16.msra.mxu1 %v655_v35 }
  0xea   :  { %614 = vmatprep.subr.bf16.mxu1 %v682_v1 }
  0xed   :  { %615 = vmatpush3.bf16.msra.mxu1 %v656_v36 }
  0xee   :  { %616 = vmatprep.subr.bf16.mxu1 %v682_v1 }
  0xf1   :  { %617 = vmatpush3.bf16.msra.mxu1 %v657_v47 }
  0xf2   :  { %618 = vmatprep.subr.bf16.mxu1 %v682_v1 }
  0xf5   :  { %619 = vmatpush3.bf16.msra.mxu1 %v658_v48 }
  0xf6   :  { %620 = vmatprep.subr.bf16.mxu1 %v682_v1 }
  0xf9   :  { %621 = vmatpush3.bf16.msra.mxu1 %v659_v49 }
 0x19c   :  { %v233_v38 = vpop.f32.mrf.mxu1 }
 0x19d   :  { %v234_v40 = vadd.f32 %v495_v37, %v233_v38 }
 0x19e   :  { %v584_v39 = vpop.f32.mrf.mxu1 }
 0x19f   :  { %v240_v44 = vmax.f32 %v234_v40, 0.0 }
 0x1a0   :  { %v236_v41 = vpop.f32.mrf.mxu1 }
 0x1a1   :  { %v237_v42 = vadd.f32 %v495_v37, %v236_v41 }
 0x1a2   :  { %v585_v43 = vpop.f32.mrf.mxu1 }
 0x1a3   :  { %v241_v45 = vmax.f32 %v237_v42, 0.0 }
 0x1a5   :  { %v242_v46 = vpack.c.bf16 %v241_v45, %v240_v44 }
 0x1a7   :  { %603 = vmatmul.mubr.bf16.vlgmr.msra.gmra.mxu0 %v242_v46 }
 0x267   :  { %v348_v51 = vpop.f32.mrf.mxu0 }
 0x268   :  { %v349_v53 = vadd.f32 %v504_v50, %v348_v51 }
 0x269   :  { %v604_v52 = vpop.f32.mrf.mxu0 }
 0x26a   :  { %v355_v57 = vmax.f32 %v349_v53, 0.0 }
 0x26b   :  { %v351_v54 = vpop.f32.mrf.mxu0 }
 0x26c   :  { %v352_v55 = vadd.f32 %v504_v50, %v351_v54 }
 0x26d   :  { %v605_v56 = vpop.f32.mrf.mxu0 }
 0x26e   :  { %v356_v58 = vmax.f32 %v352_v55, 0.0 }
 0x270   :  { %v357_v59 = vpack.c.bf16 %v356_v58, %v355_v57 }
 0x272   :  { %623 = vmatmul.mubr.bf16.vlgmr.msra.gmra.mxu1 %v357_v59 }
 0x332   :  { %v463_v61 = vpop.f32.mrf.mxu1 }
 0x333   :  { %v464_v62 = vadd.f32 %v513_v60, %v463_v61 }
 0x334   :  { %v624_v63 = vpop.f32.mrf.mxu1 }
 0x335   :  { %470 = vst [vmem:[#allocation2] sm:$0xff] %v464_v62 }
 0x336   :  { %v466_v0 = vpop.f32.mrf.mxu1 }
 0x337   :  { %v467_v1 = vadd.f32 %v513_v60, %v466_v0 }
 0x338   :  { %v625_v2 = vpop.f32.mrf.mxu1 }
 0x339   :  { %471 = vst [vmem:[#allocation2 + $0x8] sm:$0xff] %v467_v1 }
 0x33a   :  { %671 = shalt.err (!%p668_p4)
}
 0x33b   :  { %s685_s2 = smov 128   ;;  %s686_s8 = smov 8  }
 0x33c   :  { %483 = dma.vmem_to_hbm [thread:$0]  %s478_s24, 256, %s884_s9, [#allocation3], %s685_s2, %s685_s2, %s686_s8  }
 0x33d   :  { %680 = dma.done.wait [#allocation3], 256  }
 0x33e   :  { %681 = vsyncadd [#allocation3], 4294967040 }
 0x33f   :  { %487 = vsyncpa [#allocation3], 1 }

</bundles_post_ra>
